<compile_context>
chip_gen: v5e
topology: v5e:2x2
jax: 0.10.0
libtpu: 0.0.40
codegen_flags: <defaults>
</compile_context>

<pallas_src>
import functools

import jax
import jax.numpy as jnp
from jax.experimental import pallas as pl
from jax.experimental.pallas import tpu as pltpu


# ----------------------------------------------------------------------------
# Pallas kernel: fused  (im2col rows @ W_stem + b) -> swish (f32)
#                       (stem @ W_head_pad + b)    -> swish (f32)
#                       pool_mat(1/P) @ head       -> per-image pooled feature
# Grid iterates over row-slabs of TB*P im2col rows (TB images per step).
# ----------------------------------------------------------------------------
def _adapter_kernel(patches_ref, w_stem_ref, b_stem_ref, w_head_ref,
                    b_head_ref, pool_ref, out_ref):
    x = patches_ref[...]                                     # (ROWS, 9) bf16

    # Stem conv (matmul over im2col rows), f32 accumulate, swish in f32.
    stem = jnp.dot(x, w_stem_ref[...],
                   preferred_element_type=jnp.float32) + b_stem_ref[...]
    stem = stem * jax.nn.sigmoid(stem)                       # (ROWS, C_stem) f32

    # 1x1 head conv (pointwise == matmul), bf16 operands, f32 accumulate.
    head = jnp.dot(stem.astype(w_head_ref.dtype), w_head_ref[...],
                   preferred_element_type=jnp.float32) + b_head_ref[...]
    head = head * jax.nn.sigmoid(head)                       # (ROWS, Hpad) f32

    # Per-image global average pool as an MXU matmul; 1/P is folded into
    # pool_ref, so no separate divide pass over the (ROWS, Hpad) tile.
    out_ref[...] = jnp.dot(pool_ref[...], head,
                           preferred_element_type=jnp.float32
                           ).astype(out_ref.dtype)           # (TB, Hpad)


def _im2col_nhwc(x_nhwc, k, stride, pad):
    """Plain-JAX glue: pad + extract k*k strided patches, flattened per pixel."""
    b, h, w, c = x_nhwc.shape
    xp = jnp.pad(x_nhwc, ((0, 0), (pad, pad), (pad, pad), (0, 0)))
    h_out = (h + 2 * pad - k) // stride + 1
    w_out = (w + 2 * pad - k) // stride + 1
    cols = []
    for ky in range(k):
        for kx in range(k):
            cols.append(xp[:, ky:ky + h_out * stride:stride,
                           kx:kx + w_out * stride:stride, :])
    patches = jnp.stack(cols, axis=-2)                       # (B,Ho,Wo,k*k,C)
    return patches.reshape(b, h_out * w_out, k * k * c), h_out, w_out


def prepare_params(params, hidden_size):
    """Param-prep: fold the 3x channel repeat into w_stem, pad hidden to a
    multiple of 128 (lane-dense output), cast matmul weights to bf16.

    w_stem rows are laid out (ky*kx major, channel minor) to match
    _im2col_nhwc, so the channel fold sums axis=1 of a (9, 3, C_stem) view.
    Exactly equivalent only because all 3 channels are identical input copies.
    """
    w_stem, b_stem = params["w_stem"], params["b_stem"]
    w_head, b_head = params["w_head"], params["b_head"]
    c_stem = w_stem.shape[1]
    k2 = w_stem.shape[0] // 3                                # 9 taps
    hpad = ((hidden_size + 127) // 128) * 128

    w_stem_eff = w_stem.reshape(k2, 3, c_stem).sum(axis=1)   # (9, C_stem)
    w_head_pad = jnp.pad(w_head, ((0, 0), (0, hpad - hidden_size)))
    b_head_pad = jnp.pad(b_head, ((0, 0), (0, hpad - hidden_size)))
    return {
        "w_stem": w_stem_eff.astype(jnp.bfloat16),           # (9, C_stem)
        "b_stem": b_stem.astype(jnp.float32),                # (1, C_stem)
        "w_head": w_head_pad.astype(jnp.bfloat16),           # (C_stem, Hpad)
        "b_head": b_head_pad.astype(jnp.float32),            # (1, Hpad)
    }


@functools.partial(jax.jit, static_argnames=("hidden_size",))
def efficientnet_audio_adapter_forward(input_values, prepared, *, hidden_size):
    """input_values: (B, 1, H, W) float32, PyTorch NCHW convention."""
    B = input_values.shape[0]

    # ---- glue: NCHW(C=1) -> NHWC, single-channel im2col (channel repeat is
    #      already folded into the prepared stem weights) ----
    x = jnp.transpose(input_values, (0, 2, 3, 1))            # (B, H, W, 1)
    patches, _, _ = _im2col_nhwc(x, k=3, stride=2, pad=1)    # (B, P, 9)
    P, kdim = patches.shape[1], patches.shape[2]

    w_stem, b_stem = prepared["w_stem"], prepared["b_stem"]
    w_head, b_head = prepared["w_head"], prepared["b_head"]
    c_stem = w_stem.shape[1]
    hpad = w_head.shape[1]

    # ---- choose images-per-grid-step so each step moves a sizeable slab and
    #      feeds the MXU with >= 128 rows ----
    target_rows = 512
    tb = max(1, target_rows // P)
    if tb >= B:
        tb = B                                               # single step
    else:
        tb = max(8, (tb // 8) * 8)                           # sublane-aligned
    n_steps = -(-B // tb)
    b_padded = n_steps * tb
    rows = tb * P                                            # rows per step

    # ---- flatten to lane-major row slabs; bf16 matmul operand ----
    patches2d = patches.reshape(B * P, kdim)
    if b_padded != B:
        patches2d = jnp.pad(patches2d, ((0, (b_padded - B) * P), (0, 0)))
    patches2d = patches2d.astype(jnp.bfloat16)               # (Bpad*P, 9)

    # Pooling operator (block-diagonal ones/P): per-image mean as a matmul.
    row_img = (jnp.arange(rows) // P)[None, :]               # (1, ROWS)
    img_id = jnp.arange(tb)[:, None]                         # (TB, 1)
    pool_mat = (row_img == img_id).astype(jnp.float32) / P   # (TB, ROWS)

    pooled = pl.pallas_call(
        _adapter_kernel,
        out_shape=jax.ShapeDtypeStruct((b_padded, hpad), jnp.float32),
        grid=(n_steps,),
        in_specs=[
            pl.BlockSpec((rows, kdim), lambda i: (i, 0)),     # patch row slab
            pl.BlockSpec((kdim, c_stem), lambda i: (0, 0)),   # w_stem (folded)
            pl.BlockSpec((1, c_stem), lambda i: (0, 0)),      # b_stem
            pl.BlockSpec((c_stem, hpad), lambda i: (0, 0)),   # w_head (padded)
            pl.BlockSpec((1, hpad), lambda i: (0, 0)),        # b_head (padded)
            pl.BlockSpec((tb, rows), lambda i: (0, 0)),       # pooling matrix
        ],
        out_specs=pl.BlockSpec((tb, hpad), lambda i: (i, 0)), # lane-dense store
        compiler_params=pltpu.CompilerParams(
            dimension_semantics=("parallel",)),
    )(patches2d, w_stem, b_stem, w_head, b_head, pool_mat)

    pooled = pooled[:B, :hidden_size]                         # drop padding

    # ---- efficient_net_output.unsqueeze(1) ----
    last_hidden_state = pooled[:, None, :]                    # (B, 1, hidden)
    return {"last_hidden_state": last_hidden_state}


def init_params(key, hidden_size, c_stem=8, k=3, in_ch=3):
    """Deterministic synthetic weights (shapes implied by the surrogate net).
    w_stem rows are (kk major, channel minor), matching _im2col_nhwc."""
    k1, k2, k3, k4 = jax.random.split(key, 4)
    kdim = k * k * in_ch
    return {
        "w_stem": jax.random.normal(k1, (kdim, c_stem), jnp.float32) * 0.1,
        "b_stem": jax.random.normal(k2, (1, c_stem), jnp.float32) * 0.01,
        "w_head": jax.random.normal(k3, (c_stem, hidden_size), jnp.float32) * 0.1,
        "b_head": jax.random.normal(k4, (1, hidden_size), jnp.float32) * 0.01,
    }


def _reference_forward(input_values, params):
    """Unfused f32 reference: explicit 3x channel repeat + full-width weights."""
    x = jnp.repeat(input_values, 3, axis=1)                  # (B, 3, H, W)
    x = jnp.transpose(x, (0, 2, 3, 1))                       # NHWC
    patches, _, _ = _im2col_nhwc(x, k=3, stride=2, pad=1)    # (B, P, 27)
    stem = patches @ params["w_stem"] + params["b_stem"]
    stem = stem * jax.nn.sigmoid(stem)
    head = stem @ params["w_head"] + params["b_head"]
    head = head * jax.nn.sigmoid(head)
    return head.mean(axis=1)[:, None, :]                     # (B, 1, hidden)


if __name__ == "__main__":
    key = jax.random.PRNGKey(0)
    k_in, k_p = jax.random.split(key)

    # Small shapes consistent with the module: audio spectrogram NCHW, C=1.
    B, H, W = 2, 16, 16
    hidden_size = 32  # EfficientNetAudioEncdoerConfig(hidden_size=32) small variant

    input_values = jax.random.normal(k_in, (B, 1, H, W), jnp.float32)
    params = init_params(k_p, hidden_size)
    prepared = prepare_params(params, hidden_size)

    out = efficientnet_audio_adapter_forward(
        input_values, prepared, hidden_size=hidden_size)
    last_hidden = jax.block_until_ready(out["last_hidden_state"])

    assert last_hidden.shape == (B, 1, hidden_size), last_hidden.shape
    assert last_hidden.dtype == jnp.float32
    assert bool(jnp.all(jnp.isfinite(last_hidden)))

    # Correctness vs. the unfused f32 reference (channel-fold + bf16 operands
    # should match to bf16 rounding).
    ref = jax.block_until_ready(_reference_forward(input_values, params))
    assert jnp.allclose(last_hidden, ref, atol=2e-2, rtol=5e-2), (
        float(jnp.max(jnp.abs(last_hidden - ref))))

    print("KERNEL_OK")
</pallas_src>

<mosaic_0001>
module attributes {stable_mosaic.version = 11 : i64} {
  func.func @_adapter_kernel(%arg0: i32, %arg1: memref<128x9xbf16, #tpu.memory_space<vmem>>, %arg2: memref<9x8xbf16, #tpu.memory_space<vmem>>, %arg3: memref<1x8xf32, #tpu.memory_space<vmem>>, %arg4: memref<8x128xbf16, #tpu.memory_space<vmem>>, %arg5: memref<1x128xf32, #tpu.memory_space<vmem>>, %arg6: memref<2x128xf32, #tpu.memory_space<vmem>>, %arg7: memref<2x128xf32, #tpu.memory_space<vmem>>) attributes {dimension_semantics = [#tpu.dimension_semantics<parallel>], iteration_bounds = array<i64: 1>, scalar_prefetch = 0 : i64, scratch_operands = 0 : i64, tpu.core_type = #tpu.core_type<tc>, window_params = [{transform_indices = @transform_0, window_bounds = array<i64: 128, 9>}, {pipeline_mode = #tpu.pipeline_mode<synchronous>, transform_indices = @transform_1, window_bounds = array<i64: 9, 8>}, {pipeline_mode = #tpu.pipeline_mode<synchronous>, transform_indices = @transform_2, window_bounds = array<i64: 1, 8>}, {pipeline_mode = #tpu.pipeline_mode<synchronous>, transform_indices = @transform_3, window_bounds = array<i64: 8, 128>}, {pipeline_mode = #tpu.pipeline_mode<synchronous>, transform_indices = @transform_4, window_bounds = array<i64: 1, 128>}, {pipeline_mode = #tpu.pipeline_mode<synchronous>, transform_indices = @transform_5, window_bounds = array<i64: 2, 128>}, {transform_indices = @transform_6, window_bounds = array<i64: 2, 128>}]} {
    %c0 = arith.constant 0 : index
    %c0_0 = arith.constant 0 : index
    %0 = vector.load %arg1[%c0, %c0_0] : memref<128x9xbf16, #tpu.memory_space<vmem>>, vector<128x9xbf16>
    %c0_1 = arith.constant 0 : index
    %c0_2 = arith.constant 0 : index
    %1 = vector.load %arg2[%c0_1, %c0_2] : memref<9x8xbf16, #tpu.memory_space<vmem>>, vector<9x8xbf16>
    %cst = arith.constant dense<0.000000e+00> : vector<128x8xf32>
    %2 = tpu.matmul %0, %1, %cst {dimension_numbers = #tpu.dot_dimension_numbers<[1], [0], [0], [1], [0, 0, 1, 1], [], []>} : vector<128x9xbf16>, vector<9x8xbf16>, vector<128x8xf32> -> vector<128x8xf32>
    %c0_3 = arith.constant 0 : index
    %c0_4 = arith.constant 0 : index
    %3 = vector.load %arg3[%c0_3, %c0_4] : memref<1x8xf32, #tpu.memory_space<vmem>>, vector<1x8xf32>
    %4 = vector.broadcast %3 : vector<1x8xf32> to vector<128x8xf32>
    %5 = arith.addf %2, %4 : vector<128x8xf32>
    %6 = arith.negf %5 : vector<128x8xf32>
    %7 = math.exp %6 : vector<128x8xf32>
    %cst_5 = arith.constant 1.000000e+00 : f32
    %8 = vector.broadcast %cst_5 : f32 to vector<128x8xf32>
    %9 = arith.addf %8, %7 : vector<128x8xf32>
    %10 = arith.divf %8, %9 : vector<128x8xf32>
    %11 = arith.mulf %5, %10 : vector<128x8xf32>
    %12 = arith.truncf %11 : vector<128x8xf32> to vector<128x8xbf16>
    %c0_6 = arith.constant 0 : index
    %c0_7 = arith.constant 0 : index
    %13 = vector.load %arg4[%c0_6, %c0_7] : memref<8x128xbf16, #tpu.memory_space<vmem>>, vector<8x128xbf16>
    %cst_8 = arith.constant dense<0.000000e+00> : vector<128x128xf32>
    %14 = tpu.matmul %12, %13, %cst_8 {dimension_numbers = #tpu.dot_dimension_numbers<[1], [0], [0], [1], [0, 0, 1, 1], [], []>} : vector<128x8xbf16>, vector<8x128xbf16>, vector<128x128xf32> -> vector<128x128xf32>
    %c0_9 = arith.constant 0 : index
    %c0_10 = arith.constant 0 : index
    %15 = vector.load %arg5[%c0_9, %c0_10] : memref<1x128xf32, #tpu.memory_space<vmem>>, vector<1x128xf32>
    %16 = vector.broadcast %15 : vector<1x128xf32> to vector<128x128xf32>
    %17 = arith.addf %14, %16 : vector<128x128xf32>
    %18 = arith.negf %17 : vector<128x128xf32>
    %19 = math.exp %18 : vector<128x128xf32>
    %cst_11 = arith.constant 1.000000e+00 : f32
    %20 = vector.broadcast %cst_11 : f32 to vector<128x128xf32>
    %21 = arith.addf %20, %19 : vector<128x128xf32>
    %22 = arith.divf %20, %21 : vector<128x128xf32>
    %23 = arith.mulf %17, %22 : vector<128x128xf32>
    %c0_12 = arith.constant 0 : index
    %c0_13 = arith.constant 0 : index
    %24 = vector.load %arg6[%c0_12, %c0_13] : memref<2x128xf32, #tpu.memory_space<vmem>>, vector<2x128xf32>
    %cst_14 = arith.constant dense<0.000000e+00> : vector<2x128xf32>
    %25 = tpu.matmul %24, %23, %cst_14 {dimension_numbers = #tpu.dot_dimension_numbers<[1], [0], [0], [1], [0, 0, 1, 1], [], []>} : vector<2x128xf32>, vector<128x128xf32>, vector<2x128xf32> -> vector<2x128xf32>
    %c0_15 = arith.constant 0 : index
    %c0_16 = arith.constant 0 : index
    %26 = vector.load %arg7[%c0_15, %c0_16] : memref<2x128xf32, #tpu.memory_space<vmem>>, vector<2x128xf32>
    tpu.vector_store %arg7[%c0_15, %c0_16], %25 {strides = array<i32>} : memref<2x128xf32, #tpu.memory_space<vmem>>, vector<2x128xf32>,
    return
  }
  func.func @transform_0(%arg0: i32) -> (i32, i32) {
    %c0_i32 = arith.constant 0 : i32
    %c0_i32_0 = arith.constant 0 : i32
    return %arg0, %c0_i32 : i32, i32
  }
  func.func @transform_1(%arg0: i32) -> (i32, i32) {
    %c0_i32 = arith.constant 0 : i32
    %c0_i32_0 = arith.constant 0 : i32
    %c0_i32_1 = arith.constant 0 : i32
    return %c0_i32, %c0_i32_0 : i32, i32
  }
  func.func @transform_2(%arg0: i32) -> (i32, i32) {
    %c0_i32 = arith.constant 0 : i32
    %c0_i32_0 = arith.constant 0 : i32
    %c0_i32_1 = arith.constant 0 : i32
    return %c0_i32, %c0_i32_0 : i32, i32
  }
  func.func @transform_3(%arg0: i32) -> (i32, i32) {
    %c0_i32 = arith.constant 0 : i32
    %c0_i32_0 = arith.constant 0 : i32
    %c0_i32_1 = arith.constant 0 : i32
    return %c0_i32, %c0_i32_0 : i32, i32
  }
  func.func @transform_4(%arg0: i32) -> (i32, i32) {
    %c0_i32 = arith.constant 0 : i32
    %c0_i32_0 = arith.constant 0 : i32
    %c0_i32_1 = arith.constant 0 : i32
    return %c0_i32, %c0_i32_0 : i32, i32
  }
  func.func @transform_5(%arg0: i32) -> (i32, i32) {
    %c0_i32 = arith.constant 0 : i32
    %c0_i32_0 = arith.constant 0 : i32
    %c0_i32_1 = arith.constant 0 : i32
    return %c0_i32, %c0_i32_0 : i32, i32
  }
  func.func @transform_6(%arg0: i32) -> (i32, i32) {
    %c0_i32 = arith.constant 0 : i32
    %c0_i32_0 = arith.constant 0 : i32
    return %arg0, %c0_i32 : i32, i32
  }
}

</mosaic_0001>

<bundles_post_ra>
// kernel: efficientnet_audio_adapter_forward.1
= control target key start
LH: loop header
LB: loop body
LE: loop exit
PB: predicated region body
PF: predicated region fallthrough
CT: control target
= control target key end

     0   :  { %vm117_vm0 = vcmask 1043456   ;;  %vm118_vm1 = vcmask 1044480   ;;  %v1194_v3 = vmov 65535   ;;  %s2133_s0 = inlined_call_operand.vmem [shape: bf16[128,9], index: 0, kind: input, shape index: {}]   ;;  %s2134_s1 = inlined_call_operand.vmem [shape: bf16[9,8], index: 1, kind: input, shape index: {}]   ;;  %s2135_s2 = inlined_call_operand.vmem [shape: f32[1,8], index: 2, kind: input, shape index: {}]   ;;  %s2136_s3 = inlined_call_operand.vmem [shape: bf16[8,128], index: 3, kind: input, shape index: {}]   ;;  %s2137_s4 = inlined_call_operand.vmem [shape: f32[1,128], index: 4, kind: input, shape index: {}]   ;;  %s2138_s5 = inlined_call_operand.vmem [shape: f32[2,128], index: 5, kind: input, shape index: {}]   ;;  %s2139_s6 = inlined_call_operand.hbm [shape: f32[2,128], index: 6, kind: output, shape index: {}]  }
   0x1   :  { %v975_v0 = vld [vmem:[%s2134_s1] sm:$0xf]  ;;  %v1033_v1 = vld [vmem:[%s2134_s1] sm:$0x10]  ;;  %v119_v4 = vsel %vm117_vm0, 4294967295, %v1194_v3 }
   0x2   :  { %v976_v2 = vor.u32 %v1033_v1, %v975_v0  ;;  %v120_v5 = vsel %vm118_vm1, %v119_v4, 0 }
   0x3   :  { %11 = vsyncpa [#allocation3], 0  ;;  %v1025_v7 = vld [vmem:[%s2133_s0] sm:$0xff]  ;;  %v1030_v8 = vld [vmem:[%s2133_s0 + $0x28] sm:$0xff]  ;;  %vm92_vm2 = vcmask 72704   ;;  %s1195_s20 = smov [#allocation2]  }
   0x4   :  { %v122_v6 = vand.u32 %v976_v2, %v120_v5  ;;  %v1026_v9 = vld [vmem:[%s2133_s0 + $0x8] sm:$0xff]  ;;  %v1031_v10 = vld [vmem:[%s2133_s0 + $0x30] sm:$0xff]  ;;  %v1032_v12 = vld [vmem:[%s2133_s0 + $0x38] sm:$0xff]  ;;  %s930_s21 = sshll.u32 %s1195_s20, 4  ;;  %s932_s24 = sshll.u32 %s2139_s6, 4  ;;  %s931_s21 = int_to_ptr.vmem [resolvable:$true] %s930_s21  ;;  %s933_s24 = int_to_ptr.hbm [resolvable:$true] %s932_s24 }
   0x5   :  { %v1027_v11 = vld [vmem:[%s2133_s0 + $0x10] sm:$0xff]  ;;  %v1028_v13 = vld [vmem:[%s2133_s0 + $0x18] sm:$0xff]  ;;  %v1029_v14 = vld [vmem:[%s2133_s0 + $0x20] sm:$0xff] }
   0x6   :  { %131 = vmatpush.bf16.msra.mxu0 %v122_v6  ;;  %1034 = vmatpush.bf16.msra.mxu3 %v122_v6  ;;  %v1265_v15 = vld [vmem:[%s2135_s2] ss:$0 sm:$0xff] }
   0x7   :  { %v501_v29 = vld [vmem:[%s2136_s3] sm:$0xf] }
   0x8   :  { %v532_v31 = vsel %vm117_vm0, %v501_v29, 0 }
   0x9   :  { %977 = vmatmul.msk.bf16.vlgmr.msra.gmra.mxu0 %vm92_vm2, %v1025_v7  ;;  %982 = vmatmul.msk.bf16.vlgmr.msra.gmra.mxu3 %vm92_vm2, %v1030_v8 }
   0xa   :  { %541 = vmatpush.bf16.msra.mxu1 %v532_v31  ;;  %1035 = vmatpush.bf16.msra.mxu2 %v532_v31 }
  0x19   :  { %978 = vmatmul.msk.bf16.gmra.mxu0 %vm92_vm2, %v1026_v9  ;;  %983 = vmatmul.msk.bf16.gmra.mxu3 %vm92_vm2, %v1031_v10 }
  0x29   :  { %979 = vmatmul.msk.bf16.gmra.mxu0 %vm92_vm2, %v1027_v11  ;;  %984 = vmatmul.msk.bf16.gmra.mxu3 %vm92_vm2, %v1032_v12 }
  0x39   :  { %980 = vmatmul.msk.bf16.gmra.mxu0 %vm92_vm2, %v1028_v13 }
  0x49   :  { %981 = vmatmul.msk.bf16.gmra.mxu0 %vm92_vm2, %v1029_v14 }
  0x86   :  { %v133_v16 = vpop.f32.mrf.mxu0 }
  0x87   :  { %v1268_v17 = vadd.f32 %v1265_v15, %v133_v16 }
  0x89   :  { %v985_v18 = vmul.f32 -1.442695, %v1268_v17 }
  0x8b   :  { %1040 = vpow2.f32 %v985_v18 }
  0x8c   :  { %v158_v19 = vpop.f32.mrf.mxu3 }
  0x8d   :  { %v1272_v20 = vadd.f32 %v1265_v15, %v158_v19 }
  0x8e   :  { %v135_v21 = vpop.f32.mrf.mxu0 }
  0x8f   :  { %v995_v22 = vmul.f32 -1.442695, %v1272_v20  ;;  %v1276_v23 = vadd.f32 %v1265_v15, %v135_v21 }
  0x91   :  { %v1041_v24 = vpop.eup %1040  ;;  %1042 = vpow2.f32 %v995_v22  ;;  %v986_v25 = vmul.f32 -1.442695, %v1276_v23 }
  0x92   :  { %v1279_v26 = vadd.f32 1.0, %v1041_v24 }
  0x93   :  { %1044 = vpow2.f32 %v986_v25 }
  0x94   :  { %v160_v27 = vpop.f32.mrf.mxu3  ;;  %1046 = vrcp.f32 %v1279_v26  ;;  %v248_v52 = vand.u32 2147483648, %v1279_v26  ;;  %v246_v57 = vand.u32 2147483647, %v1279_v26  ;;  %vm242_vm3 = vweird.f32 %v1279_v26 }
  0x95   :  { %v1283_v28 = vadd.f32 %v1265_v15, %v160_v27 }
  0x96   :  { %v138_v30 = vpop.f32.mrf.mxu0  ;;  %v249_v61 = vor.u32 1.1754944e-38, %v248_v52  ;;  %vm1339_vm4 = vcmp.eq.f32.partialorder %v246_v57, 8.507059e+37 }
  0x97   :  { %v1043_v32 = vpop.eup %1042  ;;  %v996_v33 = vmul.f32 -1.442695, %v1283_v28  ;;  %v1291_v34 = vadd.f32 %v1265_v15, %v138_v30 }
  0x98   :  { %v1293_v35 = vadd.f32 1.0, %v1043_v32 }
  0x99   :  { %v1045_v36 = vpop.eup %1044  ;;  %1048 = vpow2.f32 %v996_v33  ;;  %v987_v37 = vmul.f32 -1.442695, %v1291_v34 }
  0x9a   :  { %1050 = vrcp.f32 %v1293_v35  ;;  %v1297_v38 = vpop.eup %1046  ;;  %v1299_v39 = vadd.f32 1.0, %v1045_v36  ;;  %vm392_vm5 = vweird.f32 %v1293_v35  ;;  %v396_v5 = vand.u32 2147483647, %v1293_v35 }
  0x9b   :  { %1052 = vpow2.f32 %v987_v37  ;;  %v238_v41 = vmul.f32 %v1297_v38, %v1279_v26  ;;  %v398_v6 = vand.u32 2147483648, %v1293_v35  ;;  %vm243_vm6 = vweird.f32 %v1297_v38 }
  0x9c   :  { %v163_v40 = vpop.f32.mrf.mxu3  ;;  %1054 = vrcp.f32 %v1299_v39  ;;  %v261_v9 = vand.u32 2147483647, %v1299_v39  ;;  %v263_v13 = vand.u32 2147483648, %v1299_v39  ;;  %vm1361_vm8 = vcmp.eq.f32.partialorder %v396_v5, 8.507059e+37  ;;  %vm1372_vm10 = vmor %vm242_vm3, %vm243_vm6 }
  0x9d   :  { %v1305_v42 = vadd.f32 %v1265_v15, %v163_v40  ;;  %v239_v51 = vsub.f32 1.0, %v238_v41  ;;  %v399_v30 = vor.u32 1.1754944e-38, %v398_v6  ;;  %vm257_vm11 = vweird.f32 %v1299_v39 }
  0x9e   :  { %v140_v43 = vpop.f32.mrf.mxu0  ;;  %vm1377_vm12 = vcmp.eq.f32.partialorder %v261_v9, 8.507059e+37  ;;  %v264_v36 = vor.u32 1.1754944e-38, %v263_v13  ;;  %vm506_vm3 = vcmask 64512  }
  0x9f   :  { %v1049_v44 = vpop.eup %1048  ;;  %v1308_v45 = vadd.f32 %v1265_v15, %v140_v43  ;;  %v997_v48 = vmul.f32 -1.442695, %v1305_v42  ;;  %v240_v60 = vmul.f32 %v1297_v38, %v239_v51 }
  0xa0   :  { %v1310_v46 = vpop.eup %1050  ;;  %v1312_v47 = vadd.f32 1.0, %v1049_v44 }
  0xa1   :  { %v1053_v49 = vpop.eup %1052  ;;  %v388_v50 = vmul.f32 %v1310_v46, %v1293_v35  ;;  %v988_v56 = vmul.f32 -1.442695, %v1308_v45  ;;  %v241_v12 = vadd.f32 %v1297_v38, %v240_v60  ;;  %vm393_vm7 = vweird.f32 %v1310_v46 }
  0xa2   :  { %1056 = vrcp.f32 %v1312_v47  ;;  %v1319_v53 = vpop.eup %1054  ;;  %v1321_v55 = vadd.f32 1.0, %v1053_v49  ;;  %vm1389_vm13 = vmor %vm392_vm5, %vm393_vm7  ;;  %v411_v37 = vand.u32 2147483647, %v1312_v47  ;;  %vm407_vm0 = vweird.f32 %v1312_v47 }
  0xa3   :  { %v389_v54 = vsub.f32 1.0, %v388_v50  ;;  %1058 = vpow2.f32 %v997_v48  ;;  %v253_v58 = vmul.f32 %v1319_v53, %v1299_v39  ;;  %vm258_vm9 = vweird.f32 %v1319_v53 }
  0xa4   :  { %v165_v59 = vpop.f32.mrf.mxu3  ;;  %1060 = vrcp.f32 %v1321_v55  ;;  %v245_v33 = vsel %vm1372_vm10, %v1297_v38, %v241_v12  ;;  %vm1401_vm14 = vmor %vm257_vm11, %vm258_vm9  ;;  %v413_v50 = vand.u32 2147483648, %v1312_v47  ;;  %v278_v51 = vand.u32 2147483648, %v1321_v55 }
  0xa5   :  { %v254_v62 = vsub.f32 1.0, %v253_v58  ;;  %v390_v0 = vmul.f32 %v1310_v46, %v389_v54  ;;  %1062 = vpow2.f32 %v988_v56  ;;  %v1332_v1 = vadd.f32 %v1265_v15, %v165_v59 }
  0xa6   :  { %v143_v63 = vpop.f32.mrf.mxu0  ;;  %v250_v49 = vsel %vm1339_vm4, %v249_v61, %v245_v33  ;;  %vm1437_vm2 = vcmp.eq.f32.partialorder %v411_v37, 8.507059e+37  ;;  %v414_v5 = vor.u32 1.1754944e-38, %v413_v50  ;;  %v276_v6 = vand.u32 2147483647, %v1321_v55 }
  0xa7   :  { %v1335_v2 = vadd.f32 %v1265_v15, %v143_v63  ;;  %v255_v7 = vmul.f32 %v1319_v53, %v254_v62  ;;  %v998_v11 = vmul.f32 -1.442695, %v1332_v1  ;;  %v391_v16 = vadd.f32 %v1310_v46, %v390_v0 }
  0xa8   :  { %v1337_v3 = vpop.eup %1056  ;;  %v477_v61 = vmul.f32 %v250_v49, %v1268_v17  ;;  %vm272_vm4 = vweird.f32 %v1321_v55 }
  0xa9   :  { %v1059_v8 = vpop.eup %1058  ;;  %v403_v10 = vmul.f32 %v1337_v3, %v1312_v47  ;;  %1064 = vpow2.f32 %v998_v11  ;;  %v989_v19 = vmul.f32 -1.442695, %v1335_v2  ;;  %v256_v24 = vadd.f32 %v1319_v53, %v255_v7 }
  0xaa   :  { %v1355_v14 = vadd.f32 1.0, %v1059_v8  ;;  %v1359_v21 = vpop.eup %1060  ;;  %v395_v41 = vsel %vm1389_vm13, %v1310_v46, %v391_v16  ;;  %vm408_vm15 = vweird.f32 %v1337_v3  ;;  %v1450_v7 = vor.u32 1.1754944e-38, %v278_v51 }
  0xab   :  { %v404_v18 = vsub.f32 1.0, %v403_v10  ;;  %v1063_v27 = vpop.eup %1062  ;;  %v268_v35 = vmul.f32 %v1359_v21, %v1321_v55  ;;  %v260_v44 = vsel %vm1401_vm14, %v1319_v53, %v256_v24  ;;  %v400_v53 = vsel %vm1361_vm8, %v399_v30, %v395_v41  ;;  %vm1433_vm1 = vmor %vm407_vm0, %vm408_vm15 }
  0xac   :  { %1066 = vrcp.f32 %v1355_v14  ;;  %v168_v25 = vpop.f32.mrf.mxu3  ;;  %v1394_v39 = vadd.f32 1.0, %v1063_v27  ;;  %v265_v58 = vsel %vm1377_vm12, %v264_v36, %v260_v44  ;;  %v487_v4 = vmul.f32 %v400_v53, %v1272_v20 }
  0xad   :  { %v405_v32 = vmul.f32 %v1337_v3, %v404_v18  ;;  %1068 = vpow2.f32 %v989_v19  ;;  %v1408_v43 = vadd.f32 %v1265_v15, %v168_v25  ;;  %v269_v60 = vsub.f32 1.0, %v268_v35 }
  0xae   :  { %v145_v40 = vpop.f32.mrf.mxu0  ;;  %1070 = vrcp.f32 %v1394_v39  ;;  %v478_v17 = vmul.f32 %v265_v58, %v1276_v23  ;;  %vm273_vm5 = vweird.f32 %v1359_v21  ;;  %vm422_vm6 = vweird.f32 %v1355_v14 }
  0xaf   :  { %v406_v48 = vadd.f32 %v1337_v3, %v405_v32  ;;  %v1065_v46 = vpop.eup %1064  ;;  %v999_v56 = vmul.f32 -1.442695, %v1408_v43  ;;  %v1429_v57 = vadd.f32 %v1265_v15, %v145_v40  ;;  %v270_v20 = vmul.f32 %v1359_v21, %v269_v60  ;;  %vm1504_vm13 = vmor %vm272_vm4, %vm273_vm5 }
  0xb0   :  { %v1425_v54 = vadd.f32 1.0, %v1065_v46  ;;  %v291_v23 = vand.u32 2147483647, %v1394_v39  ;;  %vm287_vm7 = vweird.f32 %v1394_v39  ;;  %v293_v19 = vand.u32 2147483648, %v1394_v39 }
  0xb1   :  { %v410_v62 = vsel %vm1433_vm1, %v1337_v3, %v406_v48  ;;  %v990_v3 = vmul.f32 -1.442695, %v1429_v57  ;;  %vm1468_vm8 = vcmp.eq.f32.partialorder %v276_v6, 8.507059e+37  ;;  %v493_v27 = vpack.c.bf16 %v478_v17, %v477_v61 }
  0xb2   :  { %v1421_v52 = vpop.eup %1066  ;;  %1072 = vrcp.f32 %v1425_v54  ;;  %v415_v11 = vsel %vm1437_vm2, %v414_v5, %v410_v62  ;;  %v271_v31 = vadd.f32 %v1359_v21, %v270_v20  ;;  %vm1482_vm11 = vcmp.eq.f32.partialorder %v291_v23, 8.507059e+37 }
  0xb3   :  { %v418_v63 = vmul.f32 %v1421_v52, %v1355_v14  ;;  %v1069_v0 = vpop.eup %1068  ;;  %1074 = vpow2.f32 %v999_v56  ;;  %v488_v24 = vmul.f32 %v415_v11, %v1283_v28  ;;  %vm423_vm10 = vweird.f32 %v1421_v52  ;;  %1001 = vmatmul.msk.bf16.vlgmr.msra.gmra.mxu1 %vm506_vm3, %v493_v27 }
  0xb4   :  { %v1071_v8 = vpop.eup %1070  ;;  %v1454_v9 = vadd.f32 1.0, %v1069_v0  ;;  %v170_v13 = vpop.f32.mrf.mxu3  ;;  %v294_v41 = vor.u32 1.1754944e-38, %v293_v19  ;;  %v443_v46 = vand.u32 2147483648, %v1425_v54  ;;  %v275_v47 = vsel %vm1504_vm13, %v1359_v21, %v271_v31  ;;  %vm1540_vm1 = vmor %vm422_vm6, %vm423_vm10 }
  0xb5   :  { %v283_v12 = vmul.f32 %v1071_v8, %v1394_v39  ;;  %v419_v16 = vsub.f32 1.0, %v418_v63  ;;  %v1473_v29 = vadd.f32 %v1265_v15, %v170_v13  ;;  %vm288_vm9 = vweird.f32 %v1071_v8 }
  0xb6   :  { %v148_v10 = vpop.f32.mrf.mxu0  ;;  %1076 = vrcp.f32 %v1454_v9  ;;  %vm1494_vm12 = vmor %vm287_vm7, %vm288_vm9  ;;  %v498_v50 = vpack.c.bf16 %v488_v24, %v487_v4  ;;  %v441_v55 = vand.u32 2147483647, %v1425_v54  ;;  %v428_v61 = vand.u32 2147483648, %v1355_v14 }
  0xb7   :  { %v284_v18 = vsub.f32 1.0, %v283_v12  ;;  %1078 = vpow2.f32 %v990_v3  ;;  %v1476_v30 = vadd.f32 %v1265_v15, %v148_v10  ;;  %v420_v28 = vmul.f32 %v1421_v52, %v419_v16 }
  0xb8   :  { %v1073_v22 = vpop.eup %1072  ;;  %v1000_v37 = vmul.f32 -1.442695, %v1473_v29  ;;  %1006 = vmatmul.msk.bf16.vlgmr.msra.gmra.mxu2 %vm506_vm3, %v498_v50  ;;  %vm437_vm15 = vweird.f32 %v1425_v54  ;;  %v426_v0 = vand.u32 2147483647, %v1355_v14  ;;  %v280_v6 = vsel %vm1468_vm8, %v1450_v7, %v275_v47 }
  0xb9   :  { %v285_v32 = vmul.f32 %v1071_v8, %v284_v18  ;;  %v433_v33 = vmul.f32 %v1073_v22, %v1425_v54  ;;  %v1075_v26 = vpop.eup %1074  ;;  %v991_v49 = vmul.f32 -1.442695, %v1476_v30  ;;  %vm438_vm14 = vweird.f32 %v1073_v22 }
  0xba   :  { %v1488_v35 = vadd.f32 1.0, %v1075_v26  ;;  %1080 = vpow2.f32 %v1000_v37  ;;  %v421_v60 = vadd.f32 %v1421_v52, %v420_v28  ;;  %vm1524_vm0 = vmor %vm437_vm15, %vm438_vm14  ;;  %v444_v17 = vor.u32 1.1754944e-38, %v443_v46 }
  0xbb   :  { %v286_v40 = vadd.f32 %v1071_v8, %v285_v32  ;;  %v434_v38 = vsub.f32 1.0, %v433_v33  ;;  %vm442_vm2 = vcmp.eq.f32.partialorder %v441_v55, 8.507059e+37  ;;  %v429_v14 = vor.u32 1.1754944e-38, %v428_v61 }
  0xbc   :  { %v1490_v44 = vpop.eup %1076  ;;  %1082 = vrcp.f32 %v1488_v35  ;;  %v425_v11 = vsel %vm1540_vm1, %v1421_v52, %v421_v60  ;;  %v479_v16 = vmul.f32 %v280_v6, %v1291_v34  ;;  %vm427_vm4 = vcmp.eq.f32.partialorder %v426_v0, 8.507059e+37 }
  0xbd   :  { %v1079_v53 = vpop.eup %1078  ;;  %v290_v39 = vsel %vm1494_vm12, %v1071_v8, %v286_v40  ;;  %v435_v58 = vmul.f32 %v1073_v22, %v434_v38  ;;  %v298_v59 = vmul.f32 %v1490_v44, %v1454_v9  ;;  %1084 = vpow2.f32 %v991_v49 }
  0xbe   :  { %v150_v51 = vpop.f32.mrf.mxu0  ;;  %v295_v62 = vsel %vm1482_vm11, %v294_v41, %v290_v39  ;;  %v1528_v4 = vadd.f32 1.0, %v1079_v53  ;;  %v430_v19 = vsel %vm427_vm4, %v429_v14, %v425_v11  ;;  %v308_v27 = vand.u32 2147483648, %v1454_v9 }
  0xbf   :  { %v436_v63 = vadd.f32 %v1073_v22, %v435_v58  ;;  %v1531_v5 = vadd.f32 %v1265_v15, %v150_v51  ;;  %v299_v3 = vsub.f32 1.0, %v298_v59  ;;  %v480_v7 = vmul.f32 %v295_v62, %v1308_v45 }
  0xc0   :  { %v1081_v10 = vpop.eup %1080  ;;  %1086 = vrcp.f32 %v1528_v4  ;;  %v306_v45 = vand.u32 2147483647, %v1454_v9  ;;  %vm302_vm5 = vweird.f32 %v1454_v9  ;;  %v489_v26 = vmul.f32 %v430_v19, %v1305_v42 }
  0xc1   :  { %v440_v8 = vsel %vm1524_vm0, %v1073_v22, %v436_v63  ;;  %v1551_v12 = vadd.f32 1.0, %v1081_v10  ;;  %v992_v23 = vmul.f32 -1.442695, %v1531_v5  ;;  %v300_v52 = vmul.f32 %v1490_v44, %v299_v3 }
  0xc2   :  { %v445_v20 = vsel %vm442_vm2, %v444_v17, %v440_v8  ;;  %v1553_v13 = vpop.eup %1082  ;;  %v494_v34 = vpack.c.bf16 %v480_v7, %v479_v16  ;;  %v321_v28 = vand.u32 2147483647, %v1528_v4  ;;  %vm303_vm6 = vweird.f32 %v1490_v44 }
  0xc3   :  { %v448_v22 = vmul.f32 %v1553_v13, %v1488_v35  ;;  %v1085_v24 = vpop.eup %1084  ;;  %v490_v25 = vmul.f32 %v445_v20, %v1332_v1  ;;  %1088 = vrcp.f32 %v1551_v12  ;;  %v301_v1 = vadd.f32 %v1490_v44, %v300_v52  ;;  %vm1587_vm9 = vmor %vm302_vm5, %vm303_vm6 }
  0xc4   :  { %v1565_v32 = vadd.f32 1.0, %v1085_v24  ;;  %1090 = vpow2.f32 %v992_v23  ;;  %vm1574_vm7 = vcmp.eq.f32.partialorder %v306_v45, 8.507059e+37  ;;  %v309_v41 = vor.u32 1.1754944e-38, %v308_v27  ;;  %1002 = vmatmul.msk.bf16.gmra.mxu1 %vm506_vm3, %v494_v34 }
  0xc5   :  { %v449_v31 = vsub.f32 1.0, %v448_v22  ;;  %v499_v42 = vpack.c.bf16 %v490_v25, %v489_v26  ;;  %vm452_vm8 = vweird.f32 %v1488_v35  ;;  %v323_v46 = vand.u32 2147483648, %v1528_v4 }
  0xc6   :  { %v153_v18 = vpop.f32.mrf.mxu0  ;;  %v1087_v33 = vpop.eup %1086  ;;  %1092 = vrcp.f32 %v1565_v32  ;;  %v456_v53 = vand.u32 2147483647, %v1488_v35  ;;  %v458_v56 = vand.u32 2147483648, %v1488_v35  ;;  %vm317_vm10 = vweird.f32 %v1528_v4 }
  0xc7   :  { %v1570_v36 = vadd.f32 %v1265_v15, %v153_v18  ;;  %v313_v40 = vmul.f32 %v1087_v33, %v1528_v4  ;;  %v450_v38 = vmul.f32 %v1553_v13, %v449_v31  ;;  %vm1594_vm11 = vcmp.eq.f32.partialorder %v321_v28, 8.507059e+37 }
  0xc8   :  { %v305_v59 = vsel %vm1587_vm9, %v1490_v44, %v301_v1  ;;  %vm318_vm12 = vweird.f32 %v1087_v33  ;;  %vm453_vm13 = vweird.f32 %v1553_v13  ;;  %1007 = vmatmul.msk.bf16.gmra.mxu2 %vm506_vm3, %v499_v42  ;;  %v324_v63 = vor.u32 1.1754944e-38, %v323_v46 }
  0xc9   :  { %v314_v48 = vsub.f32 1.0, %v313_v40  ;;  %v993_v49 = vmul.f32 -1.442695, %v1570_v36  ;;  %v1089_v50 = vpop.eup %1088  ;;  %v451_v55 = vadd.f32 %v1553_v13, %v450_v38  ;;  %v310_v6 = vsel %vm1574_vm7, %v309_v41, %v305_v59  ;;  %vm319_vm14 = vmor %vm317_vm10, %vm318_vm12 }
  0xca   :  { %v463_v47 = vmul.f32 %v1089_v50, %v1551_v12  ;;  %v1091_v60 = vpop.eup %1090  ;;  %v471_v54 = vand.u32 2147483647, %v1551_v12  ;;  %v473_v8 = vand.u32 2147483648, %v1551_v12  ;;  %vm1621_vm15 = vmor %vm452_vm8, %vm453_vm13  ;;  %vm468_vm0 = vweird.f32 %v1089_v50 }
  0xcb   :  { %v315_v9 = vmul.f32 %v1087_v33, %v314_v48  ;;  %1094 = vpow2.f32 %v993_v49  ;;  %v1608_v21 = vadd.f32 1.0, %v1091_v60  ;;  %v455_v4 = vsel %vm1621_vm15, %v1553_v13, %v451_v55 }
  0xcc   :  { %v464_v0 = vsub.f32 1.0, %v463_v47  ;;  %v1610_v44 = vpop.eup %1092  ;;  %v459_v7 = vor.u32 1.1754944e-38, %v458_v56  ;;  %vm467_vm1 = vweird.f32 %v1551_v12  ;;  %v481_v18 = vmul.f32 %v310_v6, %v1335_v2 }
  0xcd   :  { %v316_v62 = vadd.f32 %v1087_v33, %v315_v9  ;;  %v328_v11 = vmul.f32 %v1610_v44, %v1565_v32  ;;  %1096 = vrcp.f32 %v1608_v21  ;;  %vm457_vm2 = vcmp.eq.f32.partialorder %v456_v53, 8.507059e+37  ;;  %vm469_vm4 = vmor %vm467_vm1, %vm468_vm0 }
  0xce   :  { %v155_v58 = vpop.f32.mrf.mxu0  ;;  %v465_v10 = vmul.f32 %v1089_v50, %v464_v0  ;;  %v474_v19 = vor.u32 1.1754944e-38, %v473_v8  ;;  %v460_v13 = vsel %vm457_vm2, %v459_v7, %v455_v4  ;;  %vm472_vm5 = vcmp.eq.f32.partialorder %v471_v54, 8.507059e+37 }
  0xcf   :  { %v1606_v61 = vadd.f32 %v1265_v15, %v155_v58  ;;  %v320_v3 = vsel %vm319_vm14, %v1087_v33, %v316_v62  ;;  %v329_v16 = vsub.f32 1.0, %v328_v11  ;;  %v491_v2 = vmul.f32 %v460_v13, %v1408_v43 }
  0xd0   :  { %v325_v14 = vsel %vm1594_vm11, %v324_v63, %v320_v3  ;;  %v466_v20 = vadd.f32 %v1089_v50, %v465_v10  ;;  %vm333_vm6 = vweird.f32 %v1610_v44  ;;  %v338_v26 = vand.u32 2147483648, %v1565_v32 }
  0xd1   :  { %v994_v15 = vmul.f32 -1.442695, %v1606_v61  ;;  %v482_v35 = vmul.f32 %v325_v14, %v1429_v57  ;;  %v1095_v23 = vpop.eup %1094  ;;  %v330_v24 = vmul.f32 %v1610_v44, %v329_v16  ;;  %vm332_vm7 = vweird.f32 %v1565_v32 }
  0xd2   :  { %v470_v52 = vsel %vm469_vm4, %v1089_v50, %v466_v20  ;;  %v1636_v45 = vadd.f32 1.0, %v1095_v23  ;;  %v353_v43 = vand.u32 2147483648, %v1608_v21  ;;  %vm334_vm8 = vmor %vm332_vm7, %vm333_vm6  ;;  %v351_v41 = vand.u32 2147483647, %v1608_v21  ;;  %v1667_v23 = vld [vmem:[%s2137_s4] ss:$0 sm:$0xff] }
  0xd3   :  { %1098 = vpow2.f32 %v994_v15  ;;  %v475_v22 = vsel %vm472_vm5, %v474_v19, %v470_v52  ;;  %v495_v57 = vpack.c.bf16 %v482_v35, %v481_v18  ;;  %v1097_v12 = vpop.eup %1096  ;;  %v331_v31 = vadd.f32 %v1610_v44, %v330_v24 }
  0xd4   :  { %v492_v25 = vmul.f32 %v475_v22, %v1473_v29  ;;  %1100 = vrcp.f32 %v1636_v45  ;;  %v343_v27 = vmul.f32 %v1097_v12, %v1608_v21  ;;  %v336_v29 = vand.u32 2147483647, %v1565_v32 }
  0xd5   :  { %1003 = vmatmul.msk.bf16.gmra.mxu1 %vm506_vm3, %v495_v57  ;;  %vm348_vm9 = vweird.f32 %v1097_v12  ;;  %v335_v38 = vsel %vm334_vm8, %v1610_v44, %v331_v31  ;;  %v339_v48 = vor.u32 1.1754944e-38, %v338_v26  ;;  %vm347_vm10 = vweird.f32 %v1608_v21 }
  0xd6   :  { %v500_v33 = vpack.c.bf16 %v492_v25, %v491_v2  ;;  %v344_v28 = vsub.f32 1.0, %v343_v27  ;;  %vm337_vm11 = vcmp.eq.f32.partialorder %v336_v29, 8.507059e+37  ;;  %vm349_vm12 = vmor %vm347_vm10, %vm348_vm9  ;;  %v354_v32 = vor.u32 1.1754944e-38, %v353_v43 }
  0xd7   :  { %v340_v49 = vsel %vm337_vm11, %v339_v48, %v335_v38  ;;  %vm352_vm13 = vcmp.eq.f32.partialorder %v351_v41, 8.507059e+37  ;;  %v368_v44 = vand.u32 2147483648, %v1636_v45  ;;  %vm362_vm2 = vweird.f32 %v1636_v45 }
  0xd8   :  { %v345_v40 = vmul.f32 %v1097_v12, %v344_v28  ;;  %1008 = vmatmul.msk.bf16.gmra.mxu2 %vm506_vm3, %v500_v33  ;;  %v483_v58 = vmul.f32 %v340_v49, %v1476_v30  ;;  %v366_v30 = vand.u32 2147483647, %v1636_v45 }
  0xd9   :  { %v1099_v34 = vpop.eup %1098  ;;  %v369_v8 = vor.u32 1.1754944e-38, %v368_v44 }
  0xda   :  { %v230_v1 = vadd.f32 1.0, %v1099_v34  ;;  %v1101_v37 = vpop.eup %1100  ;;  %v346_v46 = vadd.f32 %v1097_v12, %v345_v40  ;;  %vm367_vm6 = vcmp.eq.f32.partialorder %v366_v30, 8.507059e+37 }
  0xdb   :  { %v358_v42 = vmul.f32 %v1101_v37, %v1636_v45  ;;  %vm363_vm0 = vweird.f32 %v1101_v37 }
  0xdc   :  { %1102 = vrcp.f32 %v230_v1  ;;  %v350_v50 = vsel %vm349_vm12, %v1097_v12, %v346_v46  ;;  %vm377_vm15 = vweird.f32 %v230_v1  ;;  %v383_v62 = vand.u32 2147483648, %v230_v1  ;;  %vm364_vm4 = vmor %vm362_vm2, %vm363_vm0 }
  0xdd   :  { %v355_v51 = vsel %vm352_vm13, %v354_v32, %v350_v50  ;;  %v359_v53 = vsub.f32 1.0, %v358_v42  ;;  %v381_v21 = vand.u32 2147483647, %v230_v1 }
  0xde   :  { %v484_v39 = vmul.f32 %v355_v51, %v1531_v5  ;;  %v384_v6 = vor.u32 1.1754944e-38, %v383_v62 }
  0xdf   :  { %v360_v9 = vmul.f32 %v1101_v37, %v359_v53  ;;  %vm382_vm5 = vcmp.eq.f32.partialorder %v381_v21, 8.507059e+37 }
  0xe0   :  { %v496_v60 = vpack.c.bf16 %v484_v39, %v483_v58 }
  0xe1   :  { %v361_v63 = vadd.f32 %v1101_v37, %v360_v9 }
  0xe2   :  { %v1103_v56 = vpop.eup %1102 }
  0xe3   :  { %v373_v59 = vmul.f32 %v1103_v56, %v230_v1  ;;  %vm378_vm14 = vweird.f32 %v1103_v56  ;;  %v365_v54 = vsel %vm364_vm4, %v1101_v37, %v361_v63 }
  0xe4   :  { %vm379_vm1 = vmor %vm377_vm15, %vm378_vm14  ;;  %v370_v17 = vsel %vm367_vm6, %v369_v8, %v365_v54 }
  0xe5   :  { %v374_v47 = vsub.f32 1.0, %v373_v59  ;;  %1004 = vmatmul.msk.bf16.gmra.mxu1 %vm506_vm3, %v496_v60  ;;  %v485_v10 = vmul.f32 %v370_v17, %v1570_v36 }
  0xe7   :  { %v375_v55 = vmul.f32 %v1103_v56, %v374_v47 }
  0xe9   :  { %v376_v0 = vadd.f32 %v1103_v56, %v375_v55 }
  0xeb   :  { %v380_v5 = vsel %vm379_vm1, %v1103_v56, %v376_v0 }
  0xec   :  { %v385_v15 = vsel %vm382_vm5, %v384_v6, %v380_v5 }
  0xed   :  { %v486_v3 = vmul.f32 %v385_v15, %v1606_v61 }
  0xef   :  { %v497_v11 = vpack.c.bf16 %v486_v3, %v485_v10 }
  0xf5   :  { %1005 = vmatmul.msk.bf16.gmra.mxu1 %vm506_vm3, %v497_v11 }
 0x130   :  { %v543_v4 = vpop.f32.mrf.mxu1 }
 0x131   :  { %v1684_v57 = vadd.f32 %v1667_v23, %v543_v4 }
 0x133   :  { %v1009_v31 = vmul.f32 -1.442695, %v1684_v57 }
 0x138   :  { %v545_v7 = vpop.f32.mrf.mxu1 }
 0x139   :  { %v1689_v2 = vadd.f32 %v1667_v23, %v545_v7 }
 0x13b   :  { %v568_v14 = vpop.f32.mrf.mxu2  ;;  %v1010_v26 = vmul.f32 -1.442695, %v1689_v2 }
 0x13c   :  { %v1670_v19 = vadd.f32 %v1667_v23, %v568_v14 }
 0x13e   :  { %v1019_v61 = vmul.f32 -1.442695, %v1670_v19 }
 0x140   :  { %1104 = vpow2.f32 %v1019_v61 }
 0x141   :  { %v548_v35 = vpop.f32.mrf.mxu1 }
 0x142   :  { %v1692_v27 = vadd.f32 %v1667_v23, %v548_v35 }
 0x143   :  { %v570_v20 = vpop.f32.mrf.mxu2 }
 0x144   :  { %v1673_v36 = vadd.f32 %v1667_v23, %v570_v20  ;;  %v1011_v37 = vmul.f32 -1.442695, %v1692_v27 }
 0x146   :  { %v1020_v45 = vmul.f32 -1.442695, %v1673_v36  ;;  %v1105_v33 = vpop.eup %1104 }
 0x147   :  { %v1706_v41 = vadd.f32 1.0, %v1105_v33 }
 0x148   :  { %1106 = vpow2.f32 %v1020_v45 }
 0x149   :  { %v550_v16 = vpop.f32.mrf.mxu1  ;;  %vm802_vm15 = vweird.f32 %v1706_v41 }
 0x14a   :  { %v1697_v28 = vadd.f32 %v1667_v23, %v550_v16 }
 0x14b   :  { %v573_v18 = vpop.f32.mrf.mxu2 }
 0x14c   :  { %v1677_v52 = vadd.f32 %v1667_v23, %v573_v18  ;;  %v1012_v48 = vmul.f32 -1.442695, %v1697_v28  ;;  %v808_v18 = vand.u32 2147483648, %v1706_v41 }
 0x14e   :  { %v1021_v25 = vmul.f32 -1.442695, %v1677_v52  ;;  %v1107_v43 = vpop.eup %1106 }
 0x14f   :  { %v1710_v32 = vadd.f32 1.0, %v1107_v43  ;;  %v806_v43 = vand.u32 2147483647, %v1706_v41 }
 0x151   :  { %vm817_vm12 = vweird.f32 %v1710_v32  ;;  %vm1863_vm6 = vcmp.eq.f32.partialorder %v806_v43, 8.507059e+37 }
 0x152   :  { %v553_v13 = vpop.f32.mrf.mxu1 }
 0x153   :  { %v575_v22 = vpop.f32.mrf.mxu2  ;;  %v1704_v40 = vadd.f32 %v1667_v23, %v553_v13 }
 0x154   :  { %v1681_v24 = vadd.f32 %v1667_v23, %v575_v22 }
 0x155   :  { %v1013_v49 = vmul.f32 -1.442695, %v1704_v40 }
 0x156   :  { %v1022_v12 = vmul.f32 -1.442695, %v1681_v24 }
 0x158   :  { %1108 = vpow2.f32 %v1022_v12 }
 0x159   :  { %1110 = vpow2.f32 %v1021_v25 }
 0x15a   :  { %v555_v34 = vpop.f32.mrf.mxu1  ;;  %1112 = vpow2.f32 %v1009_v31 }
 0x15b   :  { %v578_v1 = vpop.f32.mrf.mxu2  ;;  %1114 = vpow2.f32 %v1010_v26  ;;  %v1719_v56 = vadd.f32 %v1667_v23, %v555_v34 }
 0x15c   :  { %v1700_v29 = vadd.f32 %v1667_v23, %v578_v1 }
 0x15d   :  { %v1014_v63 = vmul.f32 -1.442695, %v1719_v56 }
 0x15e   :  { %v1023_v38 = vmul.f32 -1.442695, %v1700_v29  ;;  %v1109_v42 = vpop.eup %1108 }
 0x15f   :  { %v1111_v46 = vpop.eup %1110  ;;  %v1714_v51 = vadd.f32 1.0, %v1109_v42  ;;  %v821_v42 = vand.u32 2147483647, %v1710_v32 }
 0x160   :  { %1116 = vpow2.f32 %v1023_v38  ;;  %v1716_v53 = vadd.f32 1.0, %v1111_v46  ;;  %v1113_v58 = vpop.eup %1112 }
 0x161   :  { %1118 = vpow2.f32 %v1011_v37  ;;  %v1115_v9 = vpop.eup %1114  ;;  %v1770_v25 = vadd.f32 1.0, %v1113_v58  ;;  %vm847_vm3 = vweird.f32 %v1714_v51 }
 0x162   :  { %v558_v50 = vpop.f32.mrf.mxu1  ;;  %1120 = vrcp.f32 %v1706_v41  ;;  %v1736_v30 = vadd.f32 1.0, %v1115_v9  ;;  %v823_v9 = vand.u32 2147483648, %v1710_v32  ;;  %vm832_vm9 = vweird.f32 %v1716_v53 }
 0x163   :  { %1122 = vpow2.f32 %v1012_v48  ;;  %v580_v39 = vpop.f32.mrf.mxu2  ;;  %v1727_v60 = vadd.f32 %v1667_v23, %v558_v50  ;;  %v1783_v48 = vor.u32 1.1754944e-38, %v808_v18 }
 0x164   :  { %1124 = vrcp.f32 %v1710_v32  ;;  %v1723_v59 = vadd.f32 %v1667_v23, %v580_v39 }
 0x165   :  { %1126 = vpow2.f32 %v1013_v49  ;;  %v1015_v54 = vmul.f32 -1.442695, %v1727_v60 }
 0x166   :  { %v1117_v47 = vpop.eup %1116  ;;  %1128 = vrcp.f32 %v1714_v51  ;;  %v1024_v55 = vmul.f32 -1.442695, %v1723_v59 }
 0x167   :  { %v1119_v62 = vpop.eup %1118  ;;  %1130 = vrcp.f32 %v1716_v53  ;;  %v1732_v0 = vadd.f32 1.0, %v1117_v47 }
 0x168   :  { %v1734_v21 = vpop.eup %1120  ;;  %1132 = vpow2.f32 %v1024_v55  ;;  %v1757_v35 = vadd.f32 1.0, %v1119_v62 }
 0x169   :  { %v1123_v44 = vpop.eup %1122  ;;  %1134 = vrcp.f32 %v1732_v0  ;;  %v798_v11 = vmul.f32 %v1734_v21, %v1706_v41  ;;  %vm862_vm10 = vweird.f32 %v1732_v0  ;;  %vm803_vm13 = vweird.f32 %v1734_v21 }
 0x16a   :  { %v560_v5 = vpop.f32.mrf.mxu1  ;;  %v1739_v6 = vpop.eup %1124  ;;  %1136 = vpow2.f32 %v1014_v63  ;;  %v1764_v61 = vadd.f32 1.0, %v1123_v44  ;;  %v838_v63 = vand.u32 2147483648, %v1716_v53 }
 0x16b   :  { %v1743_v8 = vadd.f32 %v1667_v23, %v560_v5  ;;  %v1127_v15 = vpop.eup %1126  ;;  %1138 = vrcp.f32 %v1736_v30  ;;  %v813_v7 = vmul.f32 %v1739_v6, %v1710_v32  ;;  %v799_v31 = vsub.f32 1.0, %v798_v11 }
 0x16c   :  { %v1745_v17 = vpop.eup %1128  ;;  %1140 = vpow2.f32 %v1015_v54  ;;  %v1772_v12 = vadd.f32 1.0, %v1127_v15  ;;  %vm818_vm8 = vweird.f32 %v1739_v6  ;;  %v851_v11 = vand.u32 2147483647, %v1714_v51 }
 0x16d   :  { %v1016_v3 = vmul.f32 -1.442695, %v1743_v8  ;;  %v1748_v10 = vpop.eup %1130  ;;  %v843_v16 = vmul.f32 %v1745_v17, %v1714_v51  ;;  %v814_v1 = vsub.f32 1.0, %v813_v7  ;;  %v1793_v47 = vmul.f32 %v1734_v21, %v799_v31 }
 0x16e   :  { %v1133_v4 = vpop.eup %1132  ;;  %v828_v45 = vmul.f32 %v1748_v10, %v1716_v53  ;;  %vm833_vm7 = vweird.f32 %v1748_v10  ;;  %vm848_vm11 = vweird.f32 %v1745_v17 }
 0x16f   :  { %v1755_v14 = vpop.eup %1134  ;;  %v1759_v20 = vadd.f32 1.0, %v1133_v4  ;;  %1142 = vpow2.f32 %v1016_v3  ;;  %v844_v38 = vsub.f32 1.0, %v843_v16  ;;  %v815_v44 = vmul.f32 %v1739_v6, %v814_v1  ;;  %vm1855_vm4 = vmor %vm847_vm3, %vm848_vm11 }
 0x170   :  { %v858_v13 = vmul.f32 %v1755_v14, %v1732_v0  ;;  %v1137_v22 = vpop.eup %1136  ;;  %v829_v39 = vsub.f32 1.0, %v828_v45  ;;  %vm863_vm14 = vweird.f32 %v1755_v14  ;;  %vm1876_vm3 = vmor %vm832_vm9, %vm833_vm7  ;;  %vm852_vm11 = vcmp.eq.f32.partialorder %v851_v11, 8.507059e+37 }
 0x171   :  { %1144 = vrcp.f32 %v1759_v20  ;;  %v1779_v37 = vpop.eup %1138  ;;  %v1786_v49 = vadd.f32 1.0, %v1137_v22  ;;  %v845_v15 = vmul.f32 %v1745_v17, %v844_v38  ;;  %v883_v1 = vand.u32 2147483648, %v1759_v20  ;;  %vm1839_vm1 = vmor %vm862_vm10, %vm863_vm14 }
 0x172   :  { %v563_v34 = vpop.f32.mrf.mxu1  ;;  %v859_v26 = vsub.f32 1.0, %v858_v13  ;;  %1146 = vrcp.f32 %v1757_v35  ;;  %v1141_v46 = vpop.eup %1140  ;;  %v830_v4 = vmul.f32 %v1748_v10, %v829_v39  ;;  %v866_v13 = vand.u32 2147483647, %v1732_v0  ;;  %vm1916_vm9 = vmor %vm802_vm15, %vm803_vm13 }
 0x173   :  { %v1776_v33 = vadd.f32 %v1667_v23, %v563_v34  ;;  %1148 = vrcp.f32 %v1764_v61  ;;  %v1798_v54 = vadd.f32 1.0, %v1141_v46  ;;  %v868_v38 = vand.u32 2147483648, %v1732_v0 }
 0x174   :  { %1150 = vrcp.f32 %v1772_v12  ;;  %v860_v62 = vmul.f32 %v1755_v14, %v859_v26  ;;  %v846_v46 = vadd.f32 %v1745_v17, %v845_v15  ;;  %v853_v15 = vand.u32 2147483648, %v1714_v51 }
 0x175   :  { %v1017_v50 = vmul.f32 -1.442695, %v1776_v33  ;;  %v1143_v55 = vpop.eup %1142  ;;  %vm877_vm2 = vweird.f32 %v1759_v20  ;;  %vm867_vm14 = vcmp.eq.f32.partialorder %v866_v13, 8.507059e+37  ;;  %vm1896_vm7 = vcmp.eq.f32.partialorder %v821_v42, 8.507059e+37 }
 0x176   :  { %v1811_v16 = vadd.f32 1.0, %v1143_v55  ;;  %v861_v31 = vadd.f32 %v1755_v14, %v860_v62  ;;  %v881_v55 = vand.u32 2147483647, %v1759_v20  ;;  %v850_v51 = vsel %vm1855_vm4, %v1745_v17, %v846_v46 }
 0x177   :  { %1152 = vpow2.f32 %v1017_v50  ;;  %v1145_v5 = vpop.eup %1144  ;;  %v663_v32 = vmul.f32 %v1779_v37, %v1736_v30  ;;  %v701_v13 = vand.u32 2147483647, %v1764_v61  ;;  %vm727_vm4 = vweird.f32 %v1786_v49 }
 0x178   :  { %1154 = vrcp.f32 %v1786_v49  ;;  %v873_v3 = vmul.f32 %v1145_v5, %v1759_v20  ;;  %v1809_v7 = vpop.eup %1146  ;;  %vm878_vm0 = vweird.f32 %v1145_v5  ;;  %vm882_vm10 = vcmp.eq.f32.partialorder %v881_v55, 8.507059e+37 }
 0x179   :  { %v1818_v45 = vpop.eup %1148  ;;  %1156 = vrcp.f32 %v1798_v54  ;;  %vm879_vm5 = vmor %vm877_vm2, %vm878_vm0  ;;  %v824_v55 = vor.u32 1.1754944e-38, %v823_v9 }
 0x17a   :  { %v565_v18 = vpop.f32.mrf.mxu1  ;;  %v874_v34 = vsub.f32 1.0, %v873_v3  ;;  %v1825_v26 = vpop.eup %1150  ;;  %1158 = vrcp.f32 %v1811_v16  ;;  %vm1890_vm0 = vmor %vm817_vm12, %vm818_vm8  ;;  %v693_v41 = vmul.f32 %v1818_v45, %v1764_v61  ;;  %vm742_vm12 = vweird.f32 %v1798_v54 }
 0x17b   :  { %v1821_v22 = vadd.f32 %v1667_v23, %v565_v18  ;;  %v831_v18 = vadd.f32 %v1748_v10, %v830_v4  ;;  %v884_v4 = vor.u32 1.1754944e-38, %v883_v1 }
 0x17c   :  { %v875_v39 = vmul.f32 %v1145_v5, %v874_v34 }
 0x17d   :  { %v1153_v50 = vpop.eup %1152  ;;  %v1018_v23 = vmul.f32 -1.442695, %v1821_v22  ;;  %v835_v17 = vsel %vm1876_vm3, %v1748_v10, %v831_v18  ;;  %v839_v10 = vor.u32 1.1754944e-38, %v838_v63  ;;  %v2188_v18 = vand.u32 2147483647, %v1716_v53 }
 0x17e   :  { %v1835_v62 = vadd.f32 1.0, %v1153_v50  ;;  %v1845_v58 = vpop.eup %1154  ;;  %v876_v34 = vadd.f32 %v1145_v5, %v875_v39  ;;  %v865_v50 = vsel %vm1839_vm1, %v1755_v14, %v861_v31  ;;  %v816_v39 = vadd.f32 %v1739_v6, %v815_v44 }
 0x17f   :  { %1160 = vpow2.f32 %v1018_v23  ;;  %v869_v23 = vor.u32 1.1754944e-38, %v868_v38  ;;  %v1870_v31 = vpop.eup %1156  ;;  %v854_v38 = vor.u32 1.1754944e-38, %v853_v15  ;;  %v801_v44 = vadd.f32 %v1734_v21, %v1793_v47 }
 0x180   :  { %1162 = vrcp.f32 %v1835_v62  ;;  %v880_v14 = vsel %vm879_vm5, %v1145_v5, %v876_v34  ;;  %v820_v11 = vsel %vm1890_vm0, %v1739_v6, %v816_v39  ;;  %vm837_vm8 = vcmp.eq.f32.partialorder %v2188_v18, 8.507059e+37 }
 0x181   :  { %v885_v3 = vsel %vm882_vm10, %v884_v4, %v880_v14  ;;  %v870_v1 = vsel %vm867_vm14, %v869_v23, %v865_v50  ;;  %v855_v47 = vsel %vm852_vm11, %v854_v38, %v850_v51  ;;  %v678_v6 = vmul.f32 %v1809_v7, %v1757_v35 }
 0x182   :  { %v902_v5 = vmul.f32 %v885_v3, %v1723_v59  ;;  %v1900_v59 = vpop.eup %1158  ;;  %v901_v42 = vmul.f32 %v870_v1, %v1700_v29  ;;  %v840_v53 = vsel %vm837_vm8, %v839_v10, %v835_v17  ;;  %v805_v34 = vsel %vm1916_vm9, %v1734_v21, %v801_v44 }
 0x183   :  { %v900_v50 = vmul.f32 %v855_v47, %v1681_v24  ;;  %v825_v0 = vsel %vm1896_vm7, %v824_v55, %v820_v11  ;;  %v753_v23 = vmul.f32 %v1900_v59, %v1811_v16  ;;  %v738_v21 = vmul.f32 %v1870_v31, %v1798_v54 }
 0x184   :  { %904 = vmatpush.msrb.mxu2 %v902_v5  ;;  %v723_v39 = vmul.f32 %v1845_v58, %v1786_v49  ;;  %v708_v24 = vmul.f32 %v1825_v26, %v1772_v12  ;;  %v899_v14 = vmul.f32 %v840_v53, %v1677_v52  ;;  %v810_v51 = vsel %vm1863_vm6, %v1783_v48, %v805_v34 }
 0x185   :  { %v1161_v15 = vpop.eup %1160  ;;  %v664_v1 = vsub.f32 1.0, %v663_v32  ;;  %v694_v38 = vsub.f32 1.0, %v693_v41  ;;  %v679_v43 = vsub.f32 1.0, %v678_v6  ;;  %v686_v44 = vand.u32 2147483647, %v1757_v35 }
 0x186   :  { %v1924_v9 = vpop.eup %1162  ;;  %v1926_v29 = vadd.f32 1.0, %v1161_v15  ;;  %905 = vmatpush.msrb.mxu2 %v901_v42  ;;  %v898_v5 = vmul.f32 %v825_v0, %v1673_v36  ;;  %v754_v17 = vsub.f32 1.0, %v753_v23  ;;  %v688_v52 = vand.u32 2147483648, %v1757_v35 }
 0x187   :  { %v768_v4 = vmul.f32 %v1924_v9, %v1835_v62  ;;  %v897_v46 = vmul.f32 %v810_v51, %v1670_v19  ;;  %v739_v20 = vsub.f32 1.0, %v738_v21  ;;  %v724_v48 = vsub.f32 1.0, %v723_v39 }
 0x188   :  { %1164 = vrcp.f32 %v1926_v29  ;;  %906 = vmatpush.msrb.mxu2 %v900_v50  ;;  %v709_v47 = vsub.f32 1.0, %v708_v24  ;;  %v716_v11 = vand.u32 2147483647, %v1772_v12  ;;  %v703_v55 = vand.u32 2147483648, %v1764_v61 }
 0x189   :  { %v769_v3 = vsub.f32 1.0, %v768_v4  ;;  %1166 = vrcp.f32 %v1770_v25  ;;  %v1961_v15 = vmul.f32 %v1779_v37, %v664_v1  ;;  %v731_v42 = vand.u32 2147483647, %v1786_v49 }
 0x18a   :  { %907 = vmatpush.msrb.mxu2 %v899_v14  ;;  %v733_v18 = vand.u32 2147483648, %v1786_v49  ;;  %v1966_v19 = vmul.f32 %v1818_v45, %v694_v38  ;;  %v1969_v63 = vmul.f32 %v1809_v7, %v679_v43  ;;  %v755_v32 = vmul.f32 %v1900_v59, %v754_v17 }
 0x18b   :  { %v770_v10 = vmul.f32 %v1924_v9, %v769_v3  ;;  %v746_v53 = vand.u32 2147483647, %v1798_v54  ;;  %vm728_vm13 = vweird.f32 %v1845_v58  ;;  %v740_v41 = vmul.f32 %v1870_v31, %v739_v20 }
 0x18c   :  { %908 = vmatpush.msrb.mxu2 %v898_v5  ;;  %vm743_vm15 = vweird.f32 %v1870_v31  ;;  %v725_v50 = vmul.f32 %v1845_v58, %v724_v48  ;;  %v710_v0 = vmul.f32 %v1825_v26, %v709_v47  ;;  %vm773_vm1 = vweird.f32 %v1924_v9 }
 0x18d   :  { %v771_v23 = vadd.f32 %v1924_v9, %v770_v10  ;;  %vm758_vm2 = vweird.f32 %v1900_v59  ;;  %vm713_vm5 = vweird.f32 %v1825_v26  ;;  %v793_v21 = vand.u32 2147483648, %v1926_v29 }
 0x18e   :  { %v1165_v36 = vpop.eup %1164  ;;  %909 = vmatpush.msrb.mxu2 %v897_v46  ;;  %vm772_vm6 = vweird.f32 %v1835_v62  ;;  %v776_v39 = vand.u32 2147483647, %v1835_v62  ;;  %v778_v24 = vand.u32 2147483648, %v1835_v62  ;;  %v791_v51 = vand.u32 2147483647, %v1926_v29 }
 0x18f   :  { %v783_v6 = vmul.f32 %v1165_v36, %v1926_v29  ;;  %v1976_v34 = vpop.eup %1166  ;;  %vm788_vm10 = vweird.f32 %v1165_v36  ;;  %v756_v3 = vadd.f32 %v1900_v59, %v755_v32  ;;  %vm712_vm14 = vweird.f32 %v1772_v12  ;;  %vm1994_vm3 = vmor %vm772_vm6, %vm773_vm1 }
 0x190   :  { %vm757_vm11 = vweird.f32 %v1811_v16  ;;  %v761_v38 = vand.u32 2147483647, %v1811_v16  ;;  %v763_v43 = vand.u32 2147483648, %v1811_v16  ;;  %v741_v62 = vadd.f32 %v1870_v31, %v740_v41 }
 0x191   :  { %v784_v4 = vsub.f32 1.0, %v783_v6  ;;  %vm787_vm0 = vweird.f32 %v1926_v29  ;;  %v775_v17 = vsel %vm1994_vm3, %v1924_v9, %v771_v23  ;;  %vm2008_vm7 = vmor %vm757_vm11, %vm758_vm2  ;;  %vm697_vm8 = vweird.f32 %v1764_v61 }
 0x192   :  { %v648_v16 = vmul.f32 %v1976_v34, %v1770_v25  ;;  %vm789_vm9 = vmor %vm787_vm0, %vm788_vm10  ;;  %v794_v20 = vor.u32 1.1754944e-38, %v793_v21  ;;  %v779_v48 = vor.u32 1.1754944e-38, %v778_v24  ;;  %v748_v29 = vand.u32 2147483648, %v1798_v54 }
 0x193   :  { %v785_v14 = vmul.f32 %v1165_v36, %v784_v4  ;;  %v726_v47 = vadd.f32 %v1845_v58, %v725_v50  ;;  %vm792_vm1 = vcmp.eq.f32.partialorder %v791_v51, 8.507059e+37  ;;  %vm777_vm6 = vcmp.eq.f32.partialorder %v776_v39, 8.507059e+37  ;;  %vm2026_vm10 = vmor %vm742_vm12, %vm743_vm15 }
 0x194   :  { %v760_v10 = vsel %vm2008_vm7, %v1900_v59, %v756_v3  ;;  %vm682_vm2 = vweird.f32 %v1757_v35  ;;  %v780_v32 = vsel %vm777_vm6, %v779_v48, %v775_v17  ;;  %vm762_vm3 = vcmp.eq.f32.partialorder %v761_v38, 8.507059e+37  ;;  %vm2040_vm12 = vmor %vm727_vm4, %vm728_vm13 }
 0x195   :  { %v786_v5 = vadd.f32 %v1165_v36, %v785_v14  ;;  %v764_v41 = vor.u32 1.1754944e-38, %v763_v43  ;;  %v745_v59 = vsel %vm2026_vm10, %v1870_v31, %v741_v62  ;;  %v711_v50 = vadd.f32 %v1825_v26, %v710_v0  ;;  %vm2060_vm4 = vmor %vm712_vm14, %vm713_vm5 }
 0x196   :  { %vm667_vm11 = vweird.f32 %v1736_v30  ;;  %v649_v23 = vsub.f32 1.0, %v648_v16  ;;  %v749_v39 = vor.u32 1.1754944e-38, %v748_v29  ;;  %vm698_vm15 = vweird.f32 %v1818_v45 }
 0x197   :  { %v790_v9 = vsel %vm789_vm9, %v1165_v36, %v786_v5  ;;  %v765_v21 = vsel %vm762_vm3, %v764_v41, %v760_v10  ;;  %v895_v31 = vmul.f32 %v780_v32, %v1776_v33  ;;  %vm747_vm0 = vcmp.eq.f32.partialorder %v746_v53, 8.507059e+37  ;;  %vm2076_vm5 = vmor %vm697_vm8, %vm698_vm15 }
 0x198   :  { %v795_v6 = vsel %vm792_vm1, %v794_v20, %v790_v9  ;;  %v730_v0 = vsel %vm2040_vm12, %v1845_v58, %v726_v47  ;;  %v696_v24 = vadd.f32 %v1818_v45, %v1966_v19  ;;  %v750_v14 = vsel %vm747_vm0, %v749_v39, %v745_v59 }
 0x199   :  { %v896_v36 = vmul.f32 %v795_v6, %v1821_v22  ;;  %v718_v22 = vand.u32 2147483648, %v1772_v12  ;;  %vm732_vm13 = vcmp.eq.f32.partialorder %v731_v42, 8.507059e+37  ;;  %v734_v51 = vor.u32 1.1754944e-38, %v733_v18 }
 0x19a   :  { %vm683_vm7 = vweird.f32 %v1809_v7  ;;  %v894_v58 = vmul.f32 %v765_v21, %v1743_v8  ;;  %v715_v42 = vsel %vm2060_vm4, %v1825_v26, %v711_v50  ;;  %v681_v49 = vadd.f32 %v1809_v7, %v1969_v63 }
 0x19b   :  { %910 = vmatpush.msrb.mxu2 %v896_v36  ;;  %v650_v18 = vmul.f32 %v1976_v34, %v649_v23  ;;  %v735_v19 = vsel %vm732_vm13, %v734_v51, %v730_v0  ;;  %v719_v53 = vor.u32 1.1754944e-38, %v718_v22  ;;  %vm668_vm14 = vweird.f32 %v1779_v37  ;;  %vm2098_vm1 = vmor %vm682_vm2, %vm683_vm7 }
 0x19c   :  { %v671_v8 = vand.u32 2147483647, %v1736_v30  ;;  %v893_v26 = vmul.f32 %v750_v14, %v1727_v60  ;;  %vm717_vm9 = vcmp.eq.f32.partialorder %v716_v11, 8.507059e+37  ;;  %v700_v63 = vsel %vm2076_vm5, %v1818_v45, %v696_v24  ;;  %vm669_vm3 = vmor %vm667_vm11, %vm668_vm14 }
 0x19d   :  { %911 = vmatpush.msrb.mxu2 %v895_v31  ;;  %v666_v1 = vadd.f32 %v1779_v37, %v1961_v15  ;;  %v720_v38 = vsel %vm717_vm9, %v719_v53, %v715_v42  ;;  %vm702_vm8 = vcmp.eq.f32.partialorder %v701_v13, 8.507059e+37  ;;  %v704_v43 = vor.u32 1.1754944e-38, %v703_v55 }
 0x19e   :  { %v673_v12 = vand.u32 2147483648, %v1736_v30  ;;  %v892_v45 = vmul.f32 %v735_v19, %v1719_v56  ;;  %v685_v13 = vsel %vm2098_vm1, %v1809_v7, %v681_v49  ;;  %v651_v61 = vadd.f32 %v1976_v34, %v650_v18 }
 0x19f   :  { %912 = vmatpush.msrb.mxu2 %v894_v58  ;;  %vm653_vm6 = vweird.f32 %v1976_v34  ;;  %v705_v11 = vsel %vm702_vm8, %v704_v43, %v700_v63  ;;  %vm687_vm2 = vcmp.eq.f32.partialorder %v686_v44, 8.507059e+37  ;;  %v689_v55 = vor.u32 1.1754944e-38, %v688_v52 }
 0x1a0   :  { %v658_v56 = vand.u32 2147483648, %v1770_v25  ;;  %v891_v7 = vmul.f32 %v720_v38, %v1704_v40  ;;  %v670_v15 = vsel %vm669_vm3, %v1779_v37, %v666_v1  ;;  %vm652_vm10 = vweird.f32 %v1770_v25 }
 0x1a1   :  { %913 = vmatpush.msrb.mxu2 %v893_v26  ;;  %v656_v62 = vand.u32 2147483647, %v1770_v25  ;;  %v690_v44 = vsel %vm687_vm2, %v689_v55, %v685_v13  ;;  %v674_v5 = vor.u32 1.1754944e-38, %v673_v12  ;;  %vm654_vm12 = vmor %vm652_vm10, %vm653_vm6  ;;  %v890_v35 = vmul.f32 %v705_v11, %v1697_v28  ;;  %v903_v28 = vld [vmem:[%s2138_s5] sm:$0x3] }
 0x1a2   :  { %vm672_vm15 = vcmp.eq.f32.partialorder %v671_v8, 8.507059e+37  ;;  %v655_v30 = vsel %vm654_vm12, %v1976_v34, %v651_v61  ;;  %v659_v17 = vor.u32 1.1754944e-38, %v658_v56  ;;  %v889_v40 = vmul.f32 %v690_v44, %v1692_v27 }
 0x1a3   :  { %914 = vmatpush.msrb.mxu2 %v892_v45  ;;  %v675_v52 = vsel %vm672_vm15, %v674_v5, %v670_v15  ;;  %vm657_vm11 = vcmp.eq.f32.partialorder %v656_v62, 8.507059e+37 }
 0x1a4   :  { %v660_v37 = vsel %vm657_vm11, %v659_v17, %v655_v30  ;;  %v888_v46 = vmul.f32 %v675_v52, %v1689_v2 }
 0x1a5   :  { %915 = vmatpush.msrb.mxu2 %v891_v7  ;;  %v887_v25 = vmul.f32 %v660_v37, %v1684_v57 }
 0x1a7   :  { %916 = vmatpush.msrb.mxu2 %v890_v35 }
 0x1a9   :  { %917 = vmatpush.msrb.mxu2 %v889_v40 }
 0x1ab   :  { %918 = vmatpush.msrb.mxu2 %v888_v46 }
 0x1ad   :  { %919 = vmatpush.msrb.mxu2 %v887_v25 }
 0x1ae   :  { %920 = vmatmul.f32.vlgmr.msrb.gmra.mxu2 %v903_v28 }
 0x231   :  { %v921_v27 = vpop.f32.mrf.mxu2 }
 0x232   :  { %924 = vst [vmem:[#allocation2] sm:$0x3] %v921_v27 }
 0x233   :  { %935 = dma.vmem_to_hbm [thread:$0]  %s931_s21, 32, %s933_s24, [#allocation3]  }
 0x234   :  { %1192 = dma.done.wait [#allocation3], 32  }
 0x235   :  { %1193 = vsyncadd [#allocation3], 4294967264 }
 0x236   :  { %940 = vsyncpa [#allocation3], 1 }

</bundles_post_ra>
